<compile_context>
chip_gen: v7x
topology: tpu7x:2x2x1
jax: 0.10.0
libtpu: 0.0.40
codegen_flags: <defaults>
</compile_context>

<pallas_src>
import math

import jax
import jax.numpy as jnp
from jax.experimental import pallas as pl
from jax.experimental.pallas import tpu as pltpu

_LANE = 128
_LANE_CAP = 2048                      # max block lane width (multiple of 128)
_MAX_BLOCK_BYTES = 8 * 1024 * 1024    # cap on a single block
_MAX_VMEM_LIMIT = 48 * 1024 * 1024    # never ask for more scoped VMEM than this


def _copy_kernel(x_ref, o_ref):
    # Straight VMEM tile copy; tiles are lane/sublane dense by construction.
    o_ref[...] = x_ref[...]


def _sublane_pack(dtype) -> int:
    itemsize = jnp.dtype(dtype).itemsize
    return max(8, 32 // itemsize)     # 8 for f32, 16 for bf16, 32 for int8


def _block_budget():
    """Generation-aware (block_bytes, vmem_limit_bytes)."""
    vmem_cap = None
    try:
        info = pltpu.get_tpu_info()
        vmem_cap = getattr(info, "vmem_capacity_bytes", None)
    except Exception:
        vmem_cap = None
    if not vmem_cap:
        vmem_cap = 64 * 1024 * 1024   # conservative: assume v7x-sized VMEM
    vmem_limit = min(_MAX_VMEM_LIMIT, (vmem_cap * 3) // 4)
    # Double-buffered input + output = 4 block-sized buffers; keep them at
    # half of the requested limit for headroom.
    block_bytes = min(_MAX_BLOCK_BYTES, vmem_limit // 8)
    return block_bytes, vmem_limit


def _pick_2d_layout(total: int, pack: int):
    """Pick (R, C): R*C == total, C % 128 == 0 (C <= 2048), R % pack == 0."""
    if total <= 0 or total % (_LANE * pack) != 0:
        return None
    m = total // (_LANE * pack)
    gmax = _LANE_CAP // _LANE
    g = 1
    for cand in range(min(gmax, m), 0, -1):
        if m % cand == 0:
            g = cand
            break
    c = _LANE * g
    return total // c, c              # r is a multiple of pack (g | m)


def _pick_row_block(r: int, c: int, itemsize: int, pack: int,
                    target_bytes: int) -> int:
    """Largest divisor of r that is a multiple of pack and ~target_bytes,
    preferring a choice that leaves >= 2 grid steps (megacore)."""
    target_rows = max(pack, (target_bytes // (c * itemsize)) // pack * pack)
    m = r // pack
    best = pack
    best_multi = None
    for d in range(1, m + 1):
        if m % d:
            continue
        tb = pack * d
        if tb > target_rows:
            break
        best = tb
        if tb <= r // 2:
            best_multi = tb
    if best == r and best_multi is not None:
        best = best_multi             # give both TensorCores work when we can
    return best


def flatten(x: jax.Array, *, materialize: bool = False) -> jax.Array:
    """Flatten (B, ...) -> (B, prod(rest)).

    Default: metadata-only reshape (what torch .reshape(B, -1) is for a
    contiguous tensor).  materialize=True forces a fresh buffer via a
    lane-dense Pallas copy kernel.
    """
    b = x.shape[0]
    f = int(math.prod(x.shape[1:])) if len(x.shape) > 1 else 1
    total = b * f

    if not materialize:
        return x.reshape(b, f)        # zero HBM traffic

    itemsize = jnp.dtype(x.dtype).itemsize
    pack = _sublane_pack(x.dtype)

    layout = _pick_2d_layout(total, pack)
    if layout is None:
        # Not cleanly lane/sublane-tileable: a kernel would need masked
        # stores and tiny blocks — just do the metadata reshape.
        return x.reshape(b, f)

    r, c = layout
    block_bytes, vmem_limit = _block_budget()
    tb = _pick_row_block(r, c, itemsize, pack, block_bytes)

    # Metadata-only reinterpretation of the contiguous buffer.
    x2d = x.reshape(r, c)

    out2d = pl.pallas_call(
        _copy_kernel,
        out_shape=jax.ShapeDtypeStruct((r, c), x.dtype),
        grid=(pl.cdiv(r, tb),),       # tb | r, so no ragged tail step
        in_specs=[pl.BlockSpec((tb, c), lambda i: (i, 0))],
        out_specs=pl.BlockSpec((tb, c), lambda i: (i, 0)),
        compiler_params=pltpu.CompilerParams(
            dimension_semantics=("parallel",),
            vmem_limit_bytes=vmem_limit,
        ),
        cost_estimate=pl.CostEstimate(
            flops=0, transcendentals=0,
            bytes_accessed=2 * total * itemsize,
        ),
    )(x2d)

    # Metadata-only reshape back to the Flatten output shape.
    return out2d.reshape(b, f)


if __name__ == "__main__":
    key = jax.random.PRNGKey(0)
    B, C, H, W = 2, 4, 16, 16
    x = jax.random.normal(key, (B, C, H, W), dtype=jnp.float32)

    # Exercise the Pallas copy kernel once.
    y = flatten(x, materialize=True)
    jax.block_until_ready(y)

    # Default fast path (metadata reshape, no kernel).
    y_fast = flatten(x)
    jax.block_until_ready(y_fast)

    # Reference: plain reshape (what torch .reshape(batch, -1) does).
    y_ref = x.reshape(B, C * H * W)
    assert y.shape == (B, C * H * W), y.shape
    assert jnp.array_equal(y, y_ref), "Flatten kernel mismatch"
    assert jnp.array_equal(y_fast, y_ref), "Flatten fast-path mismatch"

    print("KERNEL_OK")
</pallas_src>

<mosaic_0001>
module attributes {stable_mosaic.version = 11 : i64} {
  func.func @_copy_kernel(%arg0: i32, %arg1: memref<8x256xf32, #tpu.memory_space<vmem>>, %arg2: memref<8x256xf32, #tpu.memory_space<vmem>>) attributes {dimension_semantics = [#tpu.dimension_semantics<parallel>], iteration_bounds = array<i64: 1>, scalar_prefetch = 0 : i64, scratch_operands = 0 : i64, tpu.core_type = #tpu.core_type<tc>, window_params = [{transform_indices = @transform_0, window_bounds = array<i64: 8, 256>}, {transform_indices = @transform_1, window_bounds = array<i64: 8, 256>}]} {
    %c0 = arith.constant 0 : index
    %c0_0 = arith.constant 0 : index
    %0 = vector.load %arg1[%c0, %c0_0] : memref<8x256xf32, #tpu.memory_space<vmem>>, vector<8x256xf32>
    %c0_1 = arith.constant 0 : index
    %c0_2 = arith.constant 0 : index
    %1 = vector.load %arg2[%c0_1, %c0_2] : memref<8x256xf32, #tpu.memory_space<vmem>>, vector<8x256xf32>
    tpu.vector_store %arg2[%c0_1, %c0_2], %0 {strides = array<i32>} : memref<8x256xf32, #tpu.memory_space<vmem>>, vector<8x256xf32>,
    return
  }
  func.func @transform_0(%arg0: i32) -> (i32, i32) {
    %c0_i32 = arith.constant 0 : i32
    %c0_i32_0 = arith.constant 0 : i32
    return %arg0, %c0_i32 : i32, i32
  }
  func.func @transform_1(%arg0: i32) -> (i32, i32) {
    %c0_i32 = arith.constant 0 : i32
    %c0_i32_0 = arith.constant 0 : i32
    return %arg0, %c0_i32 : i32, i32
  }
}

</mosaic_0001>

<bundles_post_ra>
// kernel: tpu_custom_call.1
= control target key start
LH: loop header
LB: loop body
LE: loop exit
PB: predicated region body
PF: predicated region fallthrough
CT: control target
= control target key end

     0   :  { %6 = vsyncpa [#allocation3], 0  ;;  %s126_s0 = inlined_call_operand.hbm [shape: f32[8,256], index: 0, kind: input, shape index: {}]   ;;  %s127_s1 = inlined_call_operand.hbm [shape: f32[8,256], index: 1, kind: output, shape index: {}]  }
   0x1   :  { %7 = vsyncpa [#allocation4], 0  ;;  %s90_s6 = smov [#allocation2]   ;;  %s42_s10 = scalar_lea.hbm %s126_s0, 256 }
   0x2   :  { %s14_s7 = sshll.u32 %s90_s6, 4  ;;  %p43_p0 = scmp.ne.s32.totalorder %s126_s0, %s42_s10  ;;  %s15_s7 = int_to_ptr.vmem [resolvable:$true] %s14_s7 }
   0x3   :  { %p46_p1 = scmp.lt.u32.totalorder %s42_s10, %s126_s0 }
   0x5   :  { %p48_p2 = pnand %p46_p1, %p43_p0 }
   0x7   :  { %51 = shalt.err (!%p48_p2)
}
   0x8   :  { %s52_s15 = scalar_lea.vmem %s15_s7, 256  ;;  %p57_p4 = scmp.lt.s32.totalorder %s15_s7, %s15_s7 }
   0x9   :  { %p53_p3 = scmp.ne.s32.totalorder %s15_s7, %s52_s15  ;;  %p58_p5 = scmp.lt.s32.totalorder %s52_s15, %s52_s15 }
   0xb   :  { %p59_p6 = por %p58_p5, %p57_p4 }
   0xd   :  { %p60_p7 = pnand %p59_p6, %p53_p3 }
   0xf   :  { %63 = shalt.err (!%p60_p7)
}
  0x10   :  { %17 = dma.hbm_to_vmem [thread:$0]  %s126_s0, 256, %s15_s7, [#allocation3]  }
  0x11   :  { %86 = dma.done.wait [#allocation3], 256  }
  0x12   :  { %87 = vsyncadd [#allocation3], 4294967040  ;;  %s91_s18 = smov [#allocation5]   ;;  %v21_v0 = vld [vmem:[#allocation2] sm:$0xff]  ;;  %v22_v1 = vld [vmem:[#allocation2 + $0x8] sm:$0xff] }
  0x13   :  { %s31_s19 = sshll.u32 %s91_s18, 4  ;;  %23 = vst [vmem:[#allocation5] sm:$0xff] %v21_v0  ;;  %24 = vst [vmem:[#allocation5 + $0x8] sm:$0xff] %v22_v1  ;;  %s32_s19 = int_to_ptr.vmem [resolvable:$true] %s31_s19 }
  0x14   :  { %s64_s20 = scalar_lea.vmem %s32_s19, 256  ;;  %p69_p9 = scmp.lt.s32.totalorder %s32_s19, %s32_s19 }
  0x15   :  { %p65_p8 = scmp.ne.s32.totalorder %s32_s19, %s64_s20  ;;  %p70_p10 = scmp.lt.s32.totalorder %s64_s20, %s64_s20 }
  0x17   :  { %p71_p11 = por %p70_p10, %p69_p9 }
  0x19   :  { %p72_p12 = pnand %p71_p11, %p65_p8 }
  0x1b   :  { %75 = shalt.err (!%p72_p12)
}
  0x1c   :  { %s76_s0 = scalar_lea.hbm %s127_s1, 256 }
  0x1d   :  { %p77_p13 = scmp.ne.s32.totalorder %s127_s1, %s76_s0  ;;  %p80_p0 = scmp.lt.u32.totalorder %s76_s0, %s127_s1 }
  0x1f   :  { %p82_p1 = pnand %p80_p0, %p77_p13 }
  0x21   :  { %85 = shalt.err (!%p82_p1)
}
  0x22   :  { %34 = dma.vmem_to_hbm [thread:$0]  %s32_s19, 256, %s127_s1, [#allocation4]  }
  0x23   :  { %88 = dma.done.wait [#allocation4], 256  }
  0x24   :  { %89 = vsyncadd [#allocation4], 4294967040 }
  0x25   :  { %38 = vsyncpa [#allocation3], 1 }
  0x26   :  { %39 = vsyncpa [#allocation4], 1 }

</bundles_post_ra>
